<compile_context>
chip_gen: v5e
topology: v5e:2x2
jax: 0.10.0
libtpu: 0.0.40
codegen_flags: <defaults>
</compile_context>

<pallas_src>
import functools

import numpy as np
import jax
import jax.numpy as jnp
from jax import lax
from jax.experimental import pallas as pl
from jax.experimental.pallas import tpu as pltpu


# ----------------------------------------------------------------------------
# Parameter construction (== utils_anchors.generate_anchors_at_window)
# ----------------------------------------------------------------------------
def generate_anchors_at_window(base_size, ratios, scales):
    ratios = np.asarray(ratios, dtype=np.float32)
    scales = np.asarray(scales, dtype=np.float32)
    num_anchors = len(ratios) * len(scales)

    anchors = np.zeros((num_anchors, 4), dtype=np.float32)
    # widths/heights start as base_size * scale (scales tiled per ratio)
    anchors[:, 2:] = base_size * np.tile(scales, (2, len(ratios))).T
    areas = anchors[:, 2] * anchors[:, 3]
    # correct for ratios (ratios repeated per scale)
    rep_ratios = np.repeat(ratios, len(scales))
    anchors[:, 2] = np.sqrt(areas / rep_ratios)
    anchors[:, 3] = anchors[:, 2] * rep_ratios
    # (0, 0, w, h) -> (-w/2, -h/2, w/2, h/2)
    anchors[:, 0::2] -= np.tile(anchors[:, 2] * 0.5, (2, 1)).T
    anchors[:, 1::2] -= np.tile(anchors[:, 3] * 0.5, (2, 1)).T
    return anchors


# ----------------------------------------------------------------------------
# Row-block sizing: size blocks by bytes, keep >=2 blocks, prefer even count
# ----------------------------------------------------------------------------
_TARGET_BLOCK_BYTES = 2 << 20   # ~2 MiB per output block (>=~0.5 us of DMA)
_MAX_BLOCK_BYTES = 6 << 20      # double-buffered output stays <= 12 MiB (v5e-safe)


def _pick_h_blk(H, Wc):
    if H <= 8:
        return H
    row_bytes = Wc * 4
    h_blk = max(8, (_TARGET_BLOCK_BYTES // row_bytes) // 8 * 8)
    h_cap = max(8, (_MAX_BLOCK_BYTES // row_bytes) // 8 * 8)
    h_blk = min(h_blk, h_cap)
    # Never exceed the largest multiple of 8 that fits in H (block <= array).
    h_blk = min(h_blk, (H // 8) * 8)
    # Keep >=2 blocks when H allows (output-DMA pipelining + v7x 2-TC split).
    if H >= 16:
        h_blk = min(h_blk, max(8, (H // 2) // 8 * 8))
    # Prefer an even number of row-blocks for balanced megacore work on v7x.
    n_blk = -(-H // h_blk)
    if n_blk > 1 and n_blk % 2 == 1:
        n_even = n_blk + 1
        h_even = max(8, ((-(-H // n_even)) + 7) // 8 * 8)
        if h_even <= (H // 8) * 8 and (-(-H // h_even)) % 2 == 0:
            h_blk = h_even
    return h_blk


# ----------------------------------------------------------------------------
# Pallas kernel: emit anchors for a block of feature-map rows (lane-dense)
# ----------------------------------------------------------------------------
def _anchor_rows_kernel(tbl_ref, out_ref, *, stride):
    # tbl_ref: (2, W*A*4) f32
    #   row 0: base anchor coord + x shift per output lane (constant over h)
    #   row 1: 1.0 where the lane is a y coordinate, else 0.0
    # out_ref: (h_blk, W*A*4) block of the (H, W*A*4) output
    tbl = tbl_ref[...]
    const_row = tbl[0:1, :]                      # (1, W*A*4)
    y_mask = tbl[1:2, :]                         # (1, W*A*4)

    h_blk = out_ref.shape[0]
    h0 = pl.program_id(0) * h_blk
    row = h0 + lax.broadcasted_iota(jnp.int32, (h_blk, 1), 0)
    sy = (row.astype(jnp.float32) + 0.5) * stride        # (h_blk, 1)

    # One mul + one add per output element; binding resource is the store DMA.
    out_ref[...] = const_row + sy * y_mask


# ----------------------------------------------------------------------------
# Module wrapper (== Anchors.forward)
# ----------------------------------------------------------------------------
class Anchors:
    def __init__(self, size, stride,
                 ratios=(0.5, 1.0, 2.0),
                 scales=(2.0 ** 0.0, 2.0 ** (1.0 / 3.0), 2.0 ** (2.0 / 3.0))):
        self.stride = float(stride)
        self.num_anchors = len(ratios) * len(scales)
        # frozen parameter (requires_grad=False in the torch module)
        self.anchors = generate_anchors_at_window(size, ratios, scales)  # (A,4) np
        self._tbl_cache = {}
        self._slab_cache = {}

    def _lane_table(self, W):
        """Host-precomputed per-lane constants for a feature-map width W."""
        tbl = self._tbl_cache.get(W)
        if tbl is None:
            A = self.num_anchors
            base = self.anchors.reshape(-1)                          # (A*4,)
            m = np.arange(A * 4)
            x_mask = (m % 2 == 0).astype(np.float32)                 # coords 0,2 -> x
            y_mask = 1.0 - x_mask                                    # coords 1,3 -> y
            sx = (np.arange(W, dtype=np.float32) + 0.5) * self.stride
            lane_const = np.tile(base, W) + np.repeat(sx, A * 4) * np.tile(x_mask, W)
            lane_ymask = np.tile(y_mask, W)
            tbl = jnp.asarray(np.stack([lane_const, lane_ymask], axis=0),
                              dtype=jnp.float32)                     # (2, W*A*4)
            self._tbl_cache[W] = tbl
        return tbl

    def _build_slab(self, H, W):
        """Run the kernel once for this (H, W); returns (H*W*A, 4) f32."""
        A = self.num_anchors
        Wc = W * A * 4
        h_blk = _pick_h_blk(H, Wc)
        n_blk = pl.cdiv(H, h_blk)
        tbl = self._lane_table(W)

        kernel = functools.partial(_anchor_rows_kernel, stride=self.stride)

        out = pl.pallas_call(
            kernel,
            out_shape=jax.ShapeDtypeStruct((H, Wc), jnp.float32),
            grid=(n_blk,),
            in_specs=[pl.BlockSpec((2, Wc), lambda i: (0, 0))],
            out_specs=pl.BlockSpec((h_blk, Wc), lambda i: (i, 0)),
            compiler_params=pltpu.CompilerParams(
                dimension_semantics=("parallel",),
                # >= every platform's scoped default; our double-buffered
                # output is capped at ~12 MiB so this always has headroom
                # (v5e's 16 MiB default would otherwise be the binding limit).
                vmem_limit_bytes=32 * 1024 * 1024),
            cost_estimate=pl.CostEstimate(
                flops=2 * H * Wc,
                transcendentals=0,
                bytes_accessed=(H * Wc + 2 * Wc) * 4),
        )(tbl)

        # Free reshape: (H, W*A*4) row-major == (H*W*A, 4) in the torch layout.
        return out.reshape(H * W * A, 4)

    def __call__(self, batch_size, feature_shape):
        H, W = int(feature_shape[0]), int(feature_shape[1])
        A = self.num_anchors

        # Anchors are a pure function of (H, W): cache the finished slab so the
        # kernel runs at most once per feature-map shape.
        key = (H, W)
        flat = self._slab_cache.get(key)
        if flat is None:
            flat = self._build_slab(H, W)
            self._slab_cache[key] = flat

        # Lazy batch broadcast (== anchors.repeat(batch_size, 1, 1)).
        return jnp.broadcast_to(flat[None, :, :], (batch_size, H * W * A, 4))


# ----------------------------------------------------------------------------
# Pure-numpy reference (== utils_anchors.shift_anchors + repeat)
# ----------------------------------------------------------------------------
def _reference(anchors, batch_size, feature_shape, stride):
    H, W = feature_shape
    sx = (np.arange(W, dtype=np.float32) + 0.5) * stride
    sy = (np.arange(H, dtype=np.float32) + 0.5) * stride
    SX, SY = np.meshgrid(sx, sy)
    shifts = np.stack([SX.ravel(), SY.ravel(), SX.ravel(), SY.ravel()],
                      axis=1).astype(np.float32)                     # (K, 4)
    all_a = (anchors[None, :, :] + shifts[:, None, :]).reshape(-1, 4)
    return np.broadcast_to(all_a, (batch_size,) + all_a.shape)


if __name__ == "__main__":
    # synthetic NCHW feature map; only its shape feeds the module
    key = jax.random.PRNGKey(0)
    x = jax.random.normal(key, (2, 4, 16, 16), dtype=jnp.float32)
    batch_size, _, H, W = x.shape

    mod = Anchors(size=32, stride=8)

    out = jax.block_until_ready(mod(batch_size, (H, W)))
    assert out.shape == (batch_size, H * W * mod.num_anchors, 4)
    ref = _reference(mod.anchors, batch_size, (H, W), mod.stride)
    np.testing.assert_allclose(np.asarray(out), ref, rtol=1e-5, atol=1e-4)

    # Second call hits the per-shape slab cache (no new device compute).
    out2 = jax.block_until_ready(mod(batch_size, (H, W)))
    np.testing.assert_allclose(np.asarray(out2), ref, rtol=1e-5, atol=1e-4)

    # H not a multiple of the row block: exercises masked writeback of the
    # partial last block (rows past H are dropped by Pallas).
    H2, W2 = 20, 12
    out3 = jax.block_until_ready(mod(3, (H2, W2)))
    assert out3.shape == (3, H2 * W2 * mod.num_anchors, 4)
    ref3 = _reference(mod.anchors, 3, (H2, W2), mod.stride)
    np.testing.assert_allclose(np.asarray(out3), ref3, rtol=1e-5, atol=1e-4)

    print("KERNEL_OK")
</pallas_src>

<mosaic_0001>
module attributes {stable_mosaic.version = 11 : i64} {
  func.func @_anchor_rows_kernel(%arg0: i32, %arg1: memref<2x576xf32, #tpu.memory_space<vmem>>, %arg2: memref<8x576xf32, #tpu.memory_space<vmem>>) attributes {dimension_semantics = [#tpu.dimension_semantics<parallel>], iteration_bounds = array<i64: 2>, scalar_prefetch = 0 : i64, scratch_operands = 0 : i64, tpu.core_type = #tpu.core_type<tc>, window_params = [{pipeline_mode = #tpu.pipeline_mode<synchronous>, transform_indices = @transform_0, window_bounds = array<i64: 2, 576>}, {transform_indices = @transform_1, window_bounds = array<i64: 8, 576>}]} {
    %c0 = arith.constant 0 : index
    %c0_0 = arith.constant 0 : index
    %0 = vector.load %arg1[%c0, %c0_0] : memref<2x576xf32, #tpu.memory_space<vmem>>, vector<2x576xf32>
    %1 = vector.extract_strided_slice %0 {offsets = [0, 0], sizes = [1, 576], strides = [1, 1]} : vector<2x576xf32> to vector<1x576xf32>
    %2 = vector.extract_strided_slice %0 {offsets = [1, 0], sizes = [1, 576], strides = [1, 1]} : vector<2x576xf32> to vector<1x576xf32>
    %c8_i32 = arith.constant 8 : i32
    %3 = arith.muli %arg0, %c8_i32 : i32
    %4 = tpu.iota {dimensions = array<i32: 0>} : vector<8x1xi32>
    %5 = vector.broadcast %3 : i32 to vector<8x1xi32>
    %6 = arith.addi %5, %4 : vector<8x1xi32>
    %7 = arith.sitofp %6 : vector<8x1xi32> to vector<8x1xf32>
    %cst = arith.constant 5.000000e-01 : f32
    %8 = vector.broadcast %cst : f32 to vector<8x1xf32>
    %9 = arith.addf %7, %8 : vector<8x1xf32>
    %cst_1 = arith.constant 8.000000e+00 : f32
    %10 = vector.broadcast %cst_1 : f32 to vector<8x1xf32>
    %11 = arith.mulf %9, %10 : vector<8x1xf32>
    %12 = vector.broadcast %11 : vector<8x1xf32> to vector<8x576xf32>
    %13 = vector.broadcast %2 : vector<1x576xf32> to vector<8x576xf32>
    %14 = arith.mulf %12, %13 : vector<8x576xf32>
    %15 = vector.broadcast %1 : vector<1x576xf32> to vector<8x576xf32>
    %16 = arith.addf %15, %14 : vector<8x576xf32>
    %c0_2 = arith.constant 0 : index
    %c0_3 = arith.constant 0 : index
    %17 = vector.load %arg2[%c0_2, %c0_3] : memref<8x576xf32, #tpu.memory_space<vmem>>, vector<8x576xf32>
    tpu.vector_store %arg2[%c0_2, %c0_3], %16 {strides = array<i32>} : memref<8x576xf32, #tpu.memory_space<vmem>>, vector<8x576xf32>,
    return
  }
  func.func @transform_0(%arg0: i32) -> (i32, i32) {
    %c0_i32 = arith.constant 0 : i32
    %c0_i32_0 = arith.constant 0 : i32
    %c0_i32_1 = arith.constant 0 : i32
    return %c0_i32, %c0_i32_0 : i32, i32
  }
  func.func @transform_1(%arg0: i32) -> (i32, i32) {
    %c0_i32 = arith.constant 0 : i32
    %c0_i32_0 = arith.constant 0 : i32
    return %arg0, %c0_i32 : i32, i32
  }
}

</mosaic_0001>

<bundles_post_ra>
// kernel: tpu_custom_call.1
= control target key start
LH: loop header
LB: loop body
LE: loop exit
PB: predicated region body
PF: predicated region fallthrough
CT: control target
= control target key end

     0   :  { %6 = vsyncpa [#allocation3], 0  ;;  %s506_s0 = inlined_call_operand.hbm [shape: f32[2,576], index: 0, kind: input, shape index: {}]   ;;  %s507_s1 = inlined_call_operand.hbm [shape: f32[16,576], index: 1, kind: output, shape index: {}]  }
   0x1   :  { %7 = vsyncpa [#allocation4], 0 }
   0x2   :  { %9 = vsyncpa [#allocation4 + $0x1], 0  ;;  %s414_s6 = smov 0   ;;  %s416_s7 = smov 0  }
   0x3   :  { %s418_s8 = smov 0   ;;  %s420_s9 = smov 0  }
   0x4 LB: > { %s435_s10 = sadd.s32 4294967295, %s401_s9   ;;  %s244_s11 = sadd.s32 4294967294, %s401_s9   ;;  %s401_s9 = sphi %s420_s9, %s513_s9   ;;  %s397_s8 = sphi %s418_s8, %s512_s8   ;;  %s393_s7 = sphi %s416_s7, %s511_s7   ;;  %s389_s6 = sphi %s414_s6, %s510_s6  }
   0x5   : > { %s439_s12 = sadd.s32 1, %s401_s9   ;;  %s43_s13 = sadd.s32 1, %s397_s8 }
   0x6   : > { %s40_s14 = ssub.s32 %s401_s9, %s439_s12  ;;  %p53_p0 = scmp.ne.s32.totalorder %s397_s8, %s393_s7 }
   0x7   : > { %p41_p1 = scmp.eq.s32.totalorder %s40_s14, 0  ;;  %p54_p2 = scmp.eq.s32.totalorder %s435_s10, 1 }
   0x8   : > { %p59_p3 = scmp.ne.s32.totalorder %s393_s7, %s389_s6  ;;  %p60_p4 = scmp.eq.s32.totalorder %s244_s11, 1 }
   0x9   : > { %s450_s15 = scalar_select %p41_p1, %s397_s8, %s43_s13  }
   0xa   : > { %p452_p5 = por %p54_p2, %p53_p0  ;;  %p456_p6 = por %p60_p4, %p59_p3 }
   0xb   : > { %p245_p7 = scmp.ge.s32.totalorder %s401_s9, 1  ;;  %p67_p8 = scmp.lt.s32.totalorder %s401_s9, 3 }
   0xc   : > { %p269_p9 = scmp.eq.s32.totalorder %s435_s10, 0  ;;  %s79_s20 = sshll.u32 %s506_s0, 4  ;;  %s80_s20 = int_to_ptr.hbm [resolvable:$true] %s79_s20 }
   0xd   : > { %p68_p10 = pnand %p245_p7, %p67_p8  ;;  %s403_s21 = smov [#allocation2]  }
   0xe   : > { %s81_s22 = sshll.u32 %s403_s21, 4  ;;  %s82_s22 = int_to_ptr.vmem [resolvable:$true] %s81_s22 }
   0xf   : > { %p261_p11 = pneg %p68_p10  ;;  %94 = sbr.rel (%p68_p10) target bundleno = 44 (0x2c), region = 24 }
  0x11   : > { %p262_p12 = pnand %p269_p9, %p261_p11 }
  0x13   : > { %264 = dma.hbm_to_vmem [thread:$0]  (!%p262_p12), %s80_s20, 160, %s82_s22, [#allocation3]  }
  0x14   : > { %380 = dma.done.wait (%p269_p9), [#allocation3], 160  }
  0x15   : > { %382 = vsyncadd (%p269_p9), [#allocation3], 4294967136  ;;  %s249_s23 = sshll.u32 %s435_s10, 3  ;;  %v113_v0 = vlaneseq  ;;  %s107_s24 = sand.u32 1, %s393_s7   ;;  %v110_v5 = vld [vmem:[#allocation2] sm:$0xff]  ;;  %vm166_vm0 = vcmask 523264  }
  0x16   : > { %v115_v1 = vstv %s249_s23  ;;  %s470_s25 = smul.u32 40, %s107_s24  ;;  %v122_v7 = vperm.slane %v110_v5, 1  ;;  %v142_v8 = vperm.slane %v110_v5, 0  ;;  %v123_v9 = vperm.slane %v110_v5, 3  ;;  %v111_v14 = vld [vmem:[#allocation2 + $0x8] sm:$0x3] }
  0x17   : > { %v114_v2 = vshrl.u32 %v113_v0, 7  ;;  %s254_s26 = smul.u32 40, %s435_s10  ;;  %v143_v10 = vperm.slane %v110_v5, 2  ;;  %v124_v11 = vperm.slane %v110_v5, 5  ;;  %v144_v12 = vperm.slane %v110_v5, 4  ;;  %s169_s4 = scalar_lea.sflag [#allocation4], %s107_s24 }
  0x18   : > { %v125_v13 = vperm.slane %v110_v5, 7  ;;  %v132_v16 = vperm.slane %v122_v7, 1  ;;  %v152_v17 = vperm.slane %v142_v8, 0  ;;  %v133_v18 = vperm.slane %v123_v9, 1  ;;  %s109_s30 = scalar_lea.vmem [#allocation5], %s470_s25  ;;  %s355_s14 = scalar_lea.hbm %s507_s1, 80 }
  0x19   : > { %v116_v3 = vadd.s32 %v115_v1, %v114_v2  ;;  %v153_v19 = vperm.slane %v143_v10, 0  ;;  %v134_v20 = vperm.slane %v124_v11, 1  ;;  %v154_v21 = vperm.slane %v144_v12, 0  ;;  %s180_s29 = scalar_lea.hbm %s507_s1, %s254_s26  ;;  %s182_s2 = sshll.u32 %s109_s30, 4  ;;  %s183_s2 = int_to_ptr.vmem [resolvable:$true] %s182_s2 }
  0x1a   : > { %v135_v22 = vperm.slane %v125_v13, 1  ;;  %v145_v25 = vperm.slane %v110_v5, 6  ;;  %v126_v26 = vperm.slane %v111_v14, 1  ;;  %v146_v29 = vperm.slane %v111_v14, 0  ;;  %s184_s3 = sshll.u32 %s180_s29, 4  ;;  %s185_s3 = int_to_ptr.hbm [resolvable:$true] %s184_s3 }
  0x1b   : > { %v117_v4 = vcvt.s32.f32 %v116_v3  ;;  %s349_s5 = sshra.s32 %s185_s3, 4  ;;  %s350_s5 = int_to_ptr.hbm [resolvable:$true] %s349_s5 }
  0x1c   : > { %v155_v32 = vperm.slane %v145_v25, 0  ;;  %v136_v33 = vperm.slane %v126_v26, 1  ;;  %v156_v35 = vperm.slane %v146_v29, 0  ;;  %s351_s10 = scalar_lea.hbm %s350_s5, 40  ;;  %p356_p2 = scmp.lt.s32.totalorder %s350_s5, %s507_s1 }
  0x1d   : > { %v118_v6 = vadd.f32 0.5, %v117_v4  ;;  %p352_p13 = scmp.ne.s32.totalorder %s350_s5, %s351_s10  ;;  %p357_p3 = scmp.lt.s32.totalorder %s355_s14, %s351_s10 }
  0x1f   : > { %v119_v15 = vmul.f32 8.0, %v118_v6  ;;  %p353_p0 = pnand %p352_p13, %p452_p5  ;;  %p358_p4 = por %p357_p3, %p356_p2 }
  0x21   : > { %v137_v23 = vmul.f32 %v132_v16, %v119_v15  ;;  %v138_v24 = vmul.f32 %v133_v18, %v119_v15  ;;  %v139_v27 = vmul.f32 %v134_v20, %v119_v15  ;;  %v140_v28 = vmul.f32 %v135_v22, %v119_v15  ;;  %p354_p1 = pneg %p353_p0 }
  0x22   : > { %v141_v37 = vmul.f32 %v136_v33, %v119_v15 }
  0x23   : > { %v157_v30 = vadd.f32 %v152_v17, %v137_v23  ;;  %v158_v31 = vadd.f32 %v153_v19, %v138_v24  ;;  %v159_v34 = vadd.f32 %v154_v21, %v139_v27  ;;  %v160_v36 = vadd.f32 %v155_v32, %v140_v28  ;;  %p359_p7 = pnand %p358_p4, %p354_p1 }
  0x24   : > { %v161_v38 = vadd.f32 %v156_v35, %v141_v37 }
  0x25   : > { %162 = vst [vmem:[%s109_s30] sm:$0xff] %v157_v30 }
  0x26   : > { %163 = vst [vmem:[%s109_s30 + $0x8] sm:$0xff] %v158_v31 }
  0x27   : > { %164 = vst [vmem:[%s109_s30 + $0x10] sm:$0xff] %v159_v34 }
  0x28   : > { %165 = vst [vmem:[%s109_s30 + $0x18] sm:$0xff] %v160_v36 }
  0x29   : > { %167 = vst.msk [vmem:[%s109_s30 + $0x20] sm:$0xff] %vm166_vm0, %v161_v38 }
  0x2a   : > { %362 = shalt.err (!%p359_p7)
}
  0x2b   : > { %259 = dma.vmem_to_hbm [thread:$0]  (%p452_p5), %s183_s2, 640, %s185_s3, %s169_s4  }
  0x2c PF: > { %p271_p8 = scmp.ge.s32.totalorder %s401_s9, 2  ;;  %s196_s20 = sand.u32 1, %s389_s6  }
  0x2d   : > { %s197_s21 = scalar_lea.sflag [#allocation4], %s196_s20 }
  0x2e   : > { %p266_p9 = pnand %p271_p8, %p456_p6 }
  0x30   : > { %p267_p10 = pneg %p266_p9 }
  0x32   : > { %384 = dma.done.wait (%p267_p10), %s197_s21, 640  }
  0x33   : > { %386 = vsyncadd (%p267_p10), %s197_s21, 4294966656  ;;  %p12_p11 = scmp.ge.s32.totalorder %s439_s12, 4   ;;  %s510_s6 = smov %s393_s7 }
  0x34   : > { %s511_s7 = smov %s397_s8  ;;  %s512_s8 = smov %s450_s15 }
  0x35   : > { %s513_s9 = smov %s439_s12  ;;  %14 = sbr.rel (!%p12_p11) target bundleno = 4 (0x4), region = 61 }
  0x3a   :  { %203 = vsyncpa [#allocation3], 1 }
  0x3b   :  { %205 = vsyncpa [#allocation3 + $0x1], 1 }
  0x3c   :  { %206 = vsyncpa [#allocation4], 1 }
  0x3d   :  { %208 = vsyncpa [#allocation4 + $0x1], 1 }

</bundles_post_ra>
